<compile_context>
chip_gen: v7x
topology: tpu7x:2x2x1
jax: 0.10.0
libtpu: 0.0.40
codegen_flags: <defaults>
</compile_context>

<pallas_src>
import math

import jax
import jax.numpy as jnp
from jax.experimental import pallas as pl
from jax.experimental.pallas import tpu as pltpu


def _round_up(x, m):
    return (x + m - 1) // m * m


def dqn_kernel(x_ref, w1_ref, b1_ref, w2_ref, b2_ref, out_ref):
    # fc1 + ReLU: cast f32 operands to bf16 at the MXU (f32 accumulate); the
    # casts are VPU slack filler under the DMA/overhead bottleneck.  Bias add
    # and ReLU stay in f32 (also fine on v5e, which has no bf16 VALU).
    x = x_ref[...].astype(jnp.bfloat16)
    w1 = w1_ref[...].astype(jnp.bfloat16)
    h = jnp.dot(x, w1, preferred_element_type=jnp.float32)
    h = jnp.maximum(h + b1_ref[...], 0.0)

    # fc2 (linear head): bf16 operands, f32 accumulate, f32 store of only the
    # A useful lanes (masked vst on a handful of lanes is negligible here).
    w2 = w2_ref[...].astype(jnp.bfloat16)
    out = jnp.dot(h.astype(jnp.bfloat16), w2, preferred_element_type=jnp.float32)
    out_ref[...] = (out + b2_ref[...]).astype(out_ref.dtype)


def dqn_forward(state, w1, b1, w2, b2, *, block_b=1024):
    """state: [B, D]; w1: [D, H]; b1: [1, H]; w2: [H, A]; b2: [1, A]."""
    B, D = state.shape
    H = w1.shape[1]
    A = w2.shape[1]

    # Batch tile: multiple of 16 sublanes (bf16 min tile is (16,128)); big
    # tiles amortize the ~0.35 us per-grid-step overhead.  Batches that fit a
    # single large tile but have >= 512 rows are split into 2 steps so the
    # "parallel" batch axis can shard across v7x's 2 TensorCores.
    B16 = _round_up(B, 16)
    tb_cap = _round_up(max(block_b, 16), 16)
    if B16 <= tb_cap:
        if B16 >= 512:
            TB = _round_up(pl.cdiv(B16, 2), 16)
        else:
            TB = B16
    else:
        TB = tb_cap
    B_pad = _round_up(B, TB)
    grid = (B_pad // TB,)

    x = state
    if B_pad != B:
        x = jnp.pad(x, ((0, B_pad - B), (0, 0)))

    cost = pl.CostEstimate(
        flops=2 * B_pad * (D * H + H * A),
        transcendentals=0,
        bytes_accessed=4 * (B_pad * D + D * H + H + H * A + A + B_pad * A),
    )

    out = pl.pallas_call(
        dqn_kernel,
        out_shape=jax.ShapeDtypeStruct((B_pad, A), jnp.float32),
        grid_spec=pltpu.PrefetchScalarGridSpec(
            num_scalar_prefetch=0,
            grid=grid,
            in_specs=[
                # State tile marches down the batch; weights/biases are
                # block-invariant (resident in VMEM for the whole call).
                pl.BlockSpec((TB, D), lambda i: (i, 0)),
                pl.BlockSpec((D, H), lambda i: (0, 0)),
                pl.BlockSpec((1, H), lambda i: (0, 0)),
                pl.BlockSpec((H, A), lambda i: (0, 0)),
                pl.BlockSpec((1, A), lambda i: (0, 0)),
            ],
            out_specs=pl.BlockSpec((TB, A), lambda i: (i, 0)),
        ),
        compiler_params=pltpu.CompilerParams(
            dimension_semantics=("parallel",),
        ),
        cost_estimate=cost,
    )(x, w1, b1, w2, b2)

    if B_pad != B:
        out = out[:B]
    return out


def init_linear(key, fan_in, fan_out):
    """PyTorch nn.Linear default init: U(-1/sqrt(fan_in), 1/sqrt(fan_in))."""
    kw, kb = jax.random.split(key)
    bound = 1.0 / math.sqrt(fan_in)
    # Stored as [in, out] (transposed relative to PyTorch's [out, in]).
    w = jax.random.uniform(kw, (fan_in, fan_out), jnp.float32, -bound, bound)
    b = jax.random.uniform(kb, (1, fan_out), jnp.float32, -bound, bound)
    return w, b


def reference_forward(state, w1, b1, w2, b2):
    """Full-f32 reference (module semantics)."""
    h = jnp.maximum(state @ w1 + b1, 0.0)
    return h @ w2 + b2


def reference_forward_bf16(state, w1, b1, w2, b2):
    """Reference mimicking the kernel's bf16 operand / f32-accumulate path."""
    xb = state.astype(jnp.bfloat16).astype(jnp.float32)
    w1b = w1.astype(jnp.bfloat16).astype(jnp.float32)
    w2b = w2.astype(jnp.bfloat16).astype(jnp.float32)
    h = jnp.maximum(xb @ w1b + b1, 0.0)
    hb = h.astype(jnp.bfloat16).astype(jnp.float32)
    return hb @ w2b + b2


if __name__ == "__main__":
    key = jax.random.PRNGKey(0)
    k_x, k_fc1, k_fc2 = jax.random.split(key, 3)

    # Small shapes consistent with the module: input_dims=[128], 512 hidden,
    # n_actions=8.
    B, D, H, A = 64, 128, 512, 8

    state = jax.random.normal(k_x, (B, D), jnp.float32)
    w1, b1 = init_linear(k_fc1, D, H)
    w2, b2 = init_linear(k_fc2, H, A)

    ref_bf = reference_forward_bf16(state, w1, b1, w2, b2)
    ref_f32 = reference_forward(state, w1, b1, w2, b2)

    # Default config: single grid step (B=64 fits one tile).
    actions = dqn_forward(state, w1, b1, w2, b2)
    actions = jax.block_until_ready(actions)
    assert actions.shape == (B, A)
    assert jnp.allclose(actions, ref_bf, atol=2e-3, rtol=2e-3)
    assert jnp.allclose(actions, ref_f32, atol=5e-2, rtol=5e-2)

    # Multi-step grid + block_b sanitization (24 -> 32 rows per tile, 2 steps).
    actions2 = dqn_forward(state, w1, b1, w2, b2, block_b=24)
    actions2 = jax.block_until_ready(actions2)
    assert actions2.shape == (B, A)
    assert jnp.allclose(actions2, ref_bf, atol=2e-3, rtol=2e-3)

    # Non-multiple batch exercises the batch-pad / slice path.
    B_odd = 50
    actions3 = dqn_forward(state[:B_odd], w1, b1, w2, b2)
    actions3 = jax.block_until_ready(actions3)
    assert actions3.shape == (B_odd, A)
    assert jnp.allclose(actions3, ref_bf[:B_odd], atol=2e-3, rtol=2e-3)

    print("KERNEL_OK")
</pallas_src>

<mosaic_0001>
module attributes {stable_mosaic.version = 11 : i64} {
  func.func @dqn_kernel(%arg0: i32, %arg1: memref<64x128xf32, #tpu.memory_space<vmem>>, %arg2: memref<128x512xf32, #tpu.memory_space<vmem>>, %arg3: memref<1x512xf32, #tpu.memory_space<vmem>>, %arg4: memref<512x8xf32, #tpu.memory_space<vmem>>, %arg5: memref<1x8xf32, #tpu.memory_space<vmem>>, %arg6: memref<64x8xf32, #tpu.memory_space<vmem>>) attributes {dimension_semantics = [#tpu.dimension_semantics<parallel>], iteration_bounds = array<i64: 1>, scalar_prefetch = 0 : i64, scratch_operands = 0 : i64, tpu.core_type = #tpu.core_type<tc>, window_params = [{transform_indices = @transform_0, window_bounds = array<i64: 64, 128>}, {pipeline_mode = #tpu.pipeline_mode<synchronous>, transform_indices = @transform_1, window_bounds = array<i64: 128, 512>}, {pipeline_mode = #tpu.pipeline_mode<synchronous>, transform_indices = @transform_2, window_bounds = array<i64: 1, 512>}, {pipeline_mode = #tpu.pipeline_mode<synchronous>, transform_indices = @transform_3, window_bounds = array<i64: 512, 8>}, {pipeline_mode = #tpu.pipeline_mode<synchronous>, transform_indices = @transform_4, window_bounds = array<i64: 1, 8>}, {transform_indices = @transform_5, window_bounds = array<i64: 64, 8>}]} {
    %c0 = arith.constant 0 : index
    %c0_0 = arith.constant 0 : index
    %0 = vector.load %arg1[%c0, %c0_0] : memref<64x128xf32, #tpu.memory_space<vmem>>, vector<64x128xf32>
    %1 = arith.truncf %0 : vector<64x128xf32> to vector<64x128xbf16>
    %c0_1 = arith.constant 0 : index
    %c0_2 = arith.constant 0 : index
    %2 = vector.load %arg2[%c0_1, %c0_2] : memref<128x512xf32, #tpu.memory_space<vmem>>, vector<128x512xf32>
    %3 = arith.truncf %2 : vector<128x512xf32> to vector<128x512xbf16>
    %cst = arith.constant dense<0.000000e+00> : vector<64x512xf32>
    %4 = tpu.matmul %1, %3, %cst {dimension_numbers = #tpu.dot_dimension_numbers<[1], [0], [0], [1], [0, 0, 1, 1], [], []>} : vector<64x128xbf16>, vector<128x512xbf16>, vector<64x512xf32> -> vector<64x512xf32>
    %c0_3 = arith.constant 0 : index
    %c0_4 = arith.constant 0 : index
    %5 = vector.load %arg3[%c0_3, %c0_4] : memref<1x512xf32, #tpu.memory_space<vmem>>, vector<1x512xf32>
    %6 = vector.broadcast %5 : vector<1x512xf32> to vector<64x512xf32>
    %7 = arith.addf %4, %6 : vector<64x512xf32>
    %cst_5 = arith.constant 0.000000e+00 : f32
    %8 = vector.broadcast %cst_5 : f32 to vector<64x512xf32>
    %9 = arith.maximumf %7, %8 : vector<64x512xf32>
    %c0_6 = arith.constant 0 : index
    %c0_7 = arith.constant 0 : index
    %10 = vector.load %arg4[%c0_6, %c0_7] : memref<512x8xf32, #tpu.memory_space<vmem>>, vector<512x8xf32>
    %11 = arith.truncf %10 : vector<512x8xf32> to vector<512x8xbf16>
    %12 = arith.truncf %9 : vector<64x512xf32> to vector<64x512xbf16>
    %cst_8 = arith.constant dense<0.000000e+00> : vector<64x8xf32>
    %13 = tpu.matmul %12, %11, %cst_8 {dimension_numbers = #tpu.dot_dimension_numbers<[1], [0], [0], [1], [0, 0, 1, 1], [], []>} : vector<64x512xbf16>, vector<512x8xbf16>, vector<64x8xf32> -> vector<64x8xf32>
    %c0_9 = arith.constant 0 : index
    %c0_10 = arith.constant 0 : index
    %14 = vector.load %arg5[%c0_9, %c0_10] : memref<1x8xf32, #tpu.memory_space<vmem>>, vector<1x8xf32>
    %15 = vector.broadcast %14 : vector<1x8xf32> to vector<64x8xf32>
    %16 = arith.addf %13, %15 : vector<64x8xf32>
    %c0_11 = arith.constant 0 : index
    %c0_12 = arith.constant 0 : index
    %17 = vector.load %arg6[%c0_11, %c0_12] : memref<64x8xf32, #tpu.memory_space<vmem>>, vector<64x8xf32>
    tpu.vector_store %arg6[%c0_11, %c0_12], %16 {strides = array<i32>} : memref<64x8xf32, #tpu.memory_space<vmem>>, vector<64x8xf32>,
    return
  }
  func.func @transform_0(%arg0: i32) -> (i32, i32) {
    %c0_i32 = arith.constant 0 : i32
    %c0_i32_0 = arith.constant 0 : i32
    return %arg0, %c0_i32 : i32, i32
  }
  func.func @transform_1(%arg0: i32) -> (i32, i32) {
    %c0_i32 = arith.constant 0 : i32
    %c0_i32_0 = arith.constant 0 : i32
    %c0_i32_1 = arith.constant 0 : i32
    return %c0_i32, %c0_i32_0 : i32, i32
  }
  func.func @transform_2(%arg0: i32) -> (i32, i32) {
    %c0_i32 = arith.constant 0 : i32
    %c0_i32_0 = arith.constant 0 : i32
    %c0_i32_1 = arith.constant 0 : i32
    return %c0_i32, %c0_i32_0 : i32, i32
  }
  func.func @transform_3(%arg0: i32) -> (i32, i32) {
    %c0_i32 = arith.constant 0 : i32
    %c0_i32_0 = arith.constant 0 : i32
    %c0_i32_1 = arith.constant 0 : i32
    return %c0_i32, %c0_i32_0 : i32, i32
  }
  func.func @transform_4(%arg0: i32) -> (i32, i32) {
    %c0_i32 = arith.constant 0 : i32
    %c0_i32_0 = arith.constant 0 : i32
    %c0_i32_1 = arith.constant 0 : i32
    return %c0_i32, %c0_i32_0 : i32, i32
  }
  func.func @transform_5(%arg0: i32) -> (i32, i32) {
    %c0_i32 = arith.constant 0 : i32
    %c0_i32_0 = arith.constant 0 : i32
    return %arg0, %c0_i32 : i32, i32
  }
}

</mosaic_0001>

<bundles_post_ra>
// kernel: tpu_custom_call.1
= control target key start
LH: loop header
LB: loop body
LE: loop exit
PB: predicated region body
PF: predicated region fallthrough
CT: control target
= control target key end

     0   :  { %10 = vsyncpa [#allocation3], 0  ;;  %s715_s18 = smov [#allocation2]   ;;  %s1241_s0 = inlined_call_operand.hbm [shape: f32[64,128], index: 0, kind: input, shape index: {}]   ;;  %s1242_s1 = inlined_call_operand.vmem [shape: f32[128,512], index: 1, kind: input, shape index: {}]   ;;  %s1243_s2 = inlined_call_operand.vmem [shape: f32[1,512], index: 2, kind: input, shape index: {}]   ;;  %s1244_s3 = inlined_call_operand.vmem [shape: f32[512,8], index: 3, kind: input, shape index: {}]   ;;  %s1245_s4 = inlined_call_operand.vmem [shape: f32[1,8], index: 4, kind: input, shape index: {}]   ;;  %s1246_s5 = inlined_call_operand.vmem [shape: f32[64,8], index: 5, kind: output, shape index: {}]  }
   0x1   :  { %s16_s19 = sshll.u32 %s715_s18, 4  ;;  %s691_s22 = scalar_lea.hbm %s1241_s0, 1024  ;;  %s17_s19 = int_to_ptr.vmem [resolvable:$true] %s16_s19 }
   0x2   :  { %p692_p0 = scmp.ne.s32.totalorder %s1241_s0, %s691_s22  ;;  %p695_p1 = scmp.lt.u32.totalorder %s691_s22, %s1241_s0 }
   0x4   :  { %p697_p2 = pnand %p695_p1, %p692_p0 }
   0x6   :  { %700 = shalt.err (!%p697_p2)
}
   0x7   :  { %s701_s27 = scalar_lea.vmem %s17_s19, 1024  ;;  %p706_p4 = scmp.lt.s32.totalorder %s17_s19, %s17_s19 }
   0x8   :  { %p702_p3 = scmp.ne.s32.totalorder %s17_s19, %s701_s27  ;;  %p707_p5 = scmp.lt.s32.totalorder %s701_s27, %s701_s27 }
   0xa   :  { %p708_p6 = por %p707_p5, %p706_p4 }
   0xc   :  { %p709_p7 = pnand %p708_p6, %p702_p3 }
   0xe   :  { %712 = shalt.err (!%p709_p7)
}
   0xf   :  { %s716_s28 = smov 128   ;;  %s717_s29 = smov 8  }
  0x10   :  { %22 = dma.hbm_to_vmem [thread:$0]  %s1241_s0, 1024, %s17_s19, [#allocation3], %s716_s28, %s716_s28, %s717_s29  }
  0x11   :  { %713 = dma.done.wait [#allocation3], 1024  }
  0x12   :  { %714 = vsyncadd [#allocation3], 4294966272  ;;  %v718_v0 = vmov 0   ;;  %v48_v1 = vld [vmem:[%s1242_s1 + $0x8] sm:$0xff]  ;;  %v50_v3 = vld [vmem:[%s1242_s1 + $0x18] sm:$0xff]  ;;  %vm592_vm0 = vcmask 64512  }
  0x13   :  { %197 = vmatprep.mubr.bf16.mxu0 %v718_v0  ;;  %270 = vmatprep.mubr.bf16.mxu1 %v718_v0  ;;  %v52_v2 = vld [vmem:[%s1242_s1 + $0x28] sm:$0xff]  ;;  %v54_v5 = vld [vmem:[%s1242_s1 + $0x38] sm:$0xff]  ;;  %v47_v6 = vld [vmem:[%s1242_s1] sm:$0xff] }
  0x14   :  { %v112_v4 = vpack.c.bf16 %v52_v2, %v48_v1  ;;  %v51_v7 = vld [vmem:[%s1242_s1 + $0x20] sm:$0xff]  ;;  %v114_v8 = vpack.c.bf16 %v54_v5, %v50_v3  ;;  %v49_v10 = vld [vmem:[%s1242_s1 + $0x10] sm:$0xff]  ;;  %v56_v12 = vld [vmem:[%s1242_s1 + $0x48] sm:$0xff] }
  0x15   :  { %v111_v9 = vpack.c.bf16 %v51_v7, %v47_v6  ;;  %v53_v11 = vld [vmem:[%s1242_s1 + $0x30] sm:$0xff]  ;;  %v60_v14 = vld [vmem:[%s1242_s1 + $0x68] sm:$0xff]  ;;  %v58_v15 = vld [vmem:[%s1242_s1 + $0x58] sm:$0xff] }
  0x16   :  { %165 = vmatprep.subr.bf16.mxu0 %v112_v4  ;;  %v113_v13 = vpack.c.bf16 %v53_v11, %v49_v10  ;;  %v62_v16 = vld [vmem:[%s1242_s1 + $0x78] sm:$0xff]  ;;  %238 = vmatprep.subr.bf16.mxu1 %v114_v8  ;;  %v116_v17 = vpack.c.bf16 %v60_v14, %v56_v12  ;;  %v55_v19 = vld [vmem:[%s1242_s1 + $0x40] sm:$0xff]  ;;  %v57_v21 = vld [vmem:[%s1242_s1 + $0x50] sm:$0xff] }
  0x17   :  { %166 = vmatpush1.bf16.msra.mxu0 %v111_v9  ;;  %v118_v18 = vpack.c.bf16 %v62_v16, %v58_v15  ;;  %v59_v20 = vld [vmem:[%s1242_s1 + $0x60] sm:$0xff]  ;;  %v61_v23 = vld [vmem:[%s1242_s1 + $0x70] sm:$0xff]  ;;  %v64_v24 = vld [vmem:[%s1242_s1 + $0x88] sm:$0xff] }
  0x18   :  { %239 = vmatpush1.bf16.msra.mxu1 %v113_v13  ;;  %v115_v22 = vpack.c.bf16 %v59_v20, %v55_v19  ;;  %v68_v25 = vld [vmem:[%s1242_s1 + $0xa8] sm:$0xff]  ;;  %167 = vmatprep.subr.bf16.mxu0 %v116_v17  ;;  %v117_v26 = vpack.c.bf16 %v61_v23, %v57_v21  ;;  %v66_v28 = vld [vmem:[%s1242_s1 + $0x98] sm:$0xff]  ;;  %v63_v30 = vld [vmem:[%s1242_s1 + $0x80] sm:$0xff] }
  0x19   :  { %240 = vmatprep.subr.bf16.mxu1 %v118_v18  ;;  %v120_v27 = vpack.c.bf16 %v68_v25, %v64_v24  ;;  %v70_v29 = vld [vmem:[%s1242_s1 + $0xb8] sm:$0xff]  ;;  %v67_v32 = vld [vmem:[%s1242_s1 + $0xa0] sm:$0xff]  ;;  %v65_v33 = vld [vmem:[%s1242_s1 + $0x90] sm:$0xff] }
  0x1a   :  { %v122_v31 = vpack.c.bf16 %v70_v29, %v66_v28  ;;  %v69_v34 = vld [vmem:[%s1242_s1 + $0xb0] sm:$0xff]  ;;  %v119_v35 = vpack.c.bf16 %v67_v32, %v63_v30  ;;  %v72_v36 = vld [vmem:[%s1242_s1 + $0xc8] sm:$0xff]  ;;  %v74_v38 = vld [vmem:[%s1242_s1 + $0xd8] sm:$0xff] }
  0x1b   :  { %168 = vmatpush1.bf16.msra.mxu0 %v115_v22  ;;  %v76_v37 = vld [vmem:[%s1242_s1 + $0xe8] sm:$0xff]  ;;  %v121_v39 = vpack.c.bf16 %v69_v34, %v65_v33  ;;  %v78_v41 = vld [vmem:[%s1242_s1 + $0xf8] sm:$0xff]  ;;  %v71_v42 = vld [vmem:[%s1242_s1 + $0xc0] sm:$0xff] }
  0x1c   :  { %241 = vmatpush1.bf16.msra.mxu1 %v117_v26  ;;  %169 = vmatprep.subr.bf16.mxu0 %v120_v27  ;;  %v124_v40 = vpack.c.bf16 %v76_v37, %v72_v36  ;;  %v75_v43 = vld [vmem:[%s1242_s1 + $0xe0] sm:$0xff]  ;;  %v126_v44 = vpack.c.bf16 %v78_v41, %v74_v38  ;;  %v73_v45 = vld [vmem:[%s1242_s1 + $0xd0] sm:$0xff]  ;;  %v80_v47 = vld [vmem:[%s1242_s1 + $0x108] sm:$0xff] }
  0x1d   :  { %242 = vmatprep.subr.bf16.mxu1 %v122_v31  ;;  %v77_v46 = vld [vmem:[%s1242_s1 + $0xf0] sm:$0xff]  ;;  %v84_v48 = vld [vmem:[%s1242_s1 + $0x128] sm:$0xff]  ;;  %v82_v49 = vld [vmem:[%s1242_s1 + $0x118] sm:$0xff]  ;;  %v123_v51 = vpack.c.bf16 %v75_v43, %v71_v42 }
  0x1e   :  { %v86_v50 = vld [vmem:[%s1242_s1 + $0x138] sm:$0xff]  ;;  %v125_v52 = vpack.c.bf16 %v77_v46, %v73_v45  ;;  %v128_v53 = vpack.c.bf16 %v84_v48, %v80_v47  ;;  %v79_v54 = vld [vmem:[%s1242_s1 + $0x100] sm:$0xff]  ;;  %v81_v56 = vld [vmem:[%s1242_s1 + $0x110] sm:$0xff] }
  0x1f   :  { %170 = vmatpush1.bf16.msra.mxu0 %v119_v35  ;;  %v83_v55 = vld [vmem:[%s1242_s1 + $0x120] sm:$0xff]  ;;  %v130_v57 = vpack.c.bf16 %v86_v50, %v82_v49  ;;  %v85_v58 = vld [vmem:[%s1242_s1 + $0x130] sm:$0xff]  ;;  %v88_v59 = vld [vmem:[%s1242_s1 + $0x148] sm:$0xff] }
  0x20   :  { %243 = vmatpush1.bf16.msra.mxu1 %v121_v39  ;;  %171 = vmatprep.subr.bf16.mxu0 %v124_v40  ;;  %v92_v60 = vld [vmem:[%s1242_s1 + $0x168] sm:$0xff]  ;;  %v90_v61 = vld [vmem:[%s1242_s1 + $0x158] sm:$0xff]  ;;  %v127_v63 = vpack.c.bf16 %v83_v55, %v79_v54  ;;  %v129_v1 = vpack.c.bf16 %v85_v58, %v81_v56  ;;  %v87_v3 = vld [vmem:[%s1242_s1 + $0x140] sm:$0xff] }
  0x21   :  { %244 = vmatprep.subr.bf16.mxu1 %v126_v44  ;;  %v94_v62 = vld [vmem:[%s1242_s1 + $0x178] sm:$0xff]  ;;  %v132_v2 = vpack.c.bf16 %v92_v60, %v88_v59  ;;  %v91_v4 = vld [vmem:[%s1242_s1 + $0x160] sm:$0xff]  ;;  %v89_v5 = vld [vmem:[%s1242_s1 + $0x150] sm:$0xff] }
  0x22   :  { %v134_v6 = vpack.c.bf16 %v94_v62, %v90_v61  ;;  %v93_v7 = vld [vmem:[%s1242_s1 + $0x170] sm:$0xff]  ;;  %v96_v8 = vld [vmem:[%s1242_s1 + $0x188] sm:$0xff]  ;;  %v98_v10 = vld [vmem:[%s1242_s1 + $0x198] sm:$0xff]  ;;  %v131_v12 = vpack.c.bf16 %v91_v4, %v87_v3 }
  0x23   :  { %172 = vmatpush1.bf16.msra.mxu0 %v123_v51  ;;  %v100_v9 = vld [vmem:[%s1242_s1 + $0x1a8] sm:$0xff]  ;;  %v102_v11 = vld [vmem:[%s1242_s1 + $0x1b8] sm:$0xff]  ;;  %v133_v13 = vpack.c.bf16 %v93_v7, %v89_v5  ;;  %v95_v15 = vld [vmem:[%s1242_s1 + $0x180] sm:$0xff] }
  0x24   :  { %245 = vmatpush1.bf16.msra.mxu1 %v125_v52  ;;  %173 = vmatprep.subr.bf16.mxu0 %v128_v53  ;;  %v136_v14 = vpack.c.bf16 %v100_v9, %v96_v8  ;;  %v99_v16 = vld [vmem:[%s1242_s1 + $0x1a0] sm:$0xff]  ;;  %v97_v17 = vld [vmem:[%s1242_s1 + $0x190] sm:$0xff]  ;;  %v138_v18 = vpack.c.bf16 %v102_v11, %v98_v10  ;;  %v104_v20 = vld [vmem:[%s1242_s1 + $0x1c8] sm:$0xff] }
  0x25   :  { %246 = vmatprep.subr.bf16.mxu1 %v130_v57  ;;  %v101_v19 = vld [vmem:[%s1242_s1 + $0x1b0] sm:$0xff]  ;;  %v108_v21 = vld [vmem:[%s1242_s1 + $0x1e8] sm:$0xff]  ;;  %v106_v22 = vld [vmem:[%s1242_s1 + $0x1d8] sm:$0xff]  ;;  %v135_v24 = vpack.c.bf16 %v99_v16, %v95_v15 }
  0x26   :  { %v110_v23 = vld [vmem:[%s1242_s1 + $0x1f8] sm:$0xff]  ;;  %v137_v25 = vpack.c.bf16 %v101_v19, %v97_v17  ;;  %v140_v26 = vpack.c.bf16 %v108_v21, %v104_v20  ;;  %v103_v27 = vld [vmem:[%s1242_s1 + $0x1c0] sm:$0xff]  ;;  %v105_v29 = vld [vmem:[%s1242_s1 + $0x1d0] sm:$0xff] }
  0x27   :  { %174 = vmatpush1.bf16.msra.mxu0 %v127_v63  ;;  %v107_v28 = vld [vmem:[%s1242_s1 + $0x1e0] sm:$0xff]  ;;  %v142_v30 = vpack.c.bf16 %v110_v23, %v106_v22  ;;  %v109_v31 = vld [vmem:[%s1242_s1 + $0x1f0] sm:$0xff]  ;;  %v360_v33 = vld [vmem:[%s1244_s3 + $0x88] sm:$0xff] }
  0x28   :  { %247 = vmatpush1.bf16.msra.mxu1 %v129_v1  ;;  %175 = vmatprep.subr.bf16.mxu0 %v132_v2  ;;  %v359_v32 = vld [vmem:[%s1244_s3 + $0x80] sm:$0xff]  ;;  %v392_v35 = vld [vmem:[%s1244_s3 + $0x188] sm:$0xff]  ;;  %v139_v36 = vpack.c.bf16 %v107_v28, %v103_v27  ;;  %v141_v39 = vpack.c.bf16 %v109_v31, %v105_v29  ;;  %v361_v47 = vld [vmem:[%s1244_s3 + $0x90] sm:$0xff] }
  0x29   :  { %248 = vmatprep.subr.bf16.mxu1 %v134_v6  ;;  %v391_v34 = vld [vmem:[%s1244_s3 + $0x180] sm:$0xff]  ;;  %v36_v38 = vld [vmem:[#allocation2 + $0x8] sm:$0xff]  ;;  %v415_v40 = vpack.c.bf16 %v360_v33, %v359_v32  ;;  %v362_v48 = vld [vmem:[%s1244_s3 + $0x98] sm:$0xff] }
  0x2a   :  { %v35_v37 = vld [vmem:[#allocation2] sm:$0xff]  ;;  %v344_v42 = vld [vmem:[%s1244_s3 + $0x8] sm:$0xff]  ;;  %v431_v43 = vpack.c.bf16 %v392_v35, %v391_v34  ;;  %v393_v49 = vld [vmem:[%s1244_s3 + $0x190] sm:$0xff]  ;;  %v416_v54 = vpack.c.bf16 %v362_v48, %v361_v47 }
  0x2b   :  { %176 = vmatpush1.bf16.msra.mxu0 %v131_v12  ;;  %v343_v41 = vld [vmem:[%s1244_s3] sm:$0xff]  ;;  %v43_v45 = vpack.c.bf16 %v36_v38, %v35_v37  ;;  %v376_v46 = vld [vmem:[%s1244_s3 + $0x108] sm:$0xff]  ;;  %v394_v50 = vld [vmem:[%s1244_s3 + $0x198] sm:$0xff] }
  0x2c   :  { %249 = vmatpush1.bf16.msra.mxu1 %v133_v13  ;;  %177 = vmatprep.subr.bf16.mxu0 %v136_v14  ;;  %v375_v44 = vld [vmem:[%s1244_s3 + $0x100] sm:$0xff]  ;;  %v407_v51 = vpack.c.bf16 %v344_v42, %v343_v41  ;;  %v37_v52 = vld [vmem:[#allocation2 + $0x10] sm:$0xff]  ;;  %v346_v56 = vld [vmem:[%s1244_s3 + $0x18] sm:$0xff]  ;;  %v432_v58 = vpack.c.bf16 %v394_v50, %v393_v49 }
  0x2d   :  { %250 = vmatprep.subr.bf16.mxu1 %v138_v18  ;;  %v423_v53 = vpack.c.bf16 %v376_v46, %v375_v44  ;;  %v345_v55 = vld [vmem:[%s1244_s3 + $0x10] sm:$0xff]  ;;  %v378_v59 = vld [vmem:[%s1244_s3 + $0x118] sm:$0xff]  ;;  %v363_v60 = vld [vmem:[%s1244_s3 + $0xa0] sm:$0xff] }
  0x2e   :  { %v377_v57 = vld [vmem:[%s1244_s3 + $0x110] sm:$0xff]  ;;  %v364_v61 = vld [vmem:[%s1244_s3 + $0xa8] sm:$0xff]  ;;  %v38_v62 = vld [vmem:[#allocation2 + $0x18] sm:$0xff]  ;;  %v408_v2 = vpack.c.bf16 %v346_v56, %v345_v55 }
  0x2f   :  { %178 = vmatpush1.bf16.msra.mxu0 %v135_v24  ;;  %v395_v63 = vld [vmem:[%s1244_s3 + $0x1a0] sm:$0xff]  ;;  %v396_v1 = vld [vmem:[%s1244_s3 + $0x1a8] sm:$0xff]  ;;  %v424_v3 = vpack.c.bf16 %v378_v59, %v377_v57  ;;  %v417_v4 = vpack.c.bf16 %v364_v61, %v363_v60  ;;  %v44_v8 = vpack.c.bf16 %v38_v62, %v37_v52  ;;  %v365_v11 = vld [vmem:[%s1244_s3 + $0xb0] sm:$0xff] }
  0x30   :  { %251 = vmatpush1.bf16.msra.mxu1 %v137_v25  ;;  %179 = vmatprep.subr.bf16.mxu0 %v140_v26  ;;  %v347_v5 = vld [vmem:[%s1244_s3 + $0x20] sm:$0xff]  ;;  %v348_v6 = vld [vmem:[%s1244_s3 + $0x28] sm:$0xff]  ;;  %v433_v9 = vpack.c.bf16 %v396_v1, %v395_v63  ;;  %v366_v12 = vld [vmem:[%s1244_s3 + $0xb8] sm:$0xff] }
  0x31   :  { %252 = vmatprep.subr.bf16.mxu1 %v142_v30  ;;  %v379_v7 = vld [vmem:[%s1244_s3 + $0x120] sm:$0xff]  ;;  %v380_v10 = vld [vmem:[%s1244_s3 + $0x128] sm:$0xff]  ;;  %v397_v13 = vld [vmem:[%s1244_s3 + $0x1b0] sm:$0xff]  ;;  %v409_v15 = vpack.c.bf16 %v348_v6, %v347_v5  ;;  %v418_v18 = vpack.c.bf16 %v366_v12, %v365_v11 }
  0x32   :  { %v398_v14 = vld [vmem:[%s1244_s3 + $0x1b8] sm:$0xff]  ;;  %v39_v16 = vld [vmem:[#allocation2 + $0x20] sm:$0xff]  ;;  %v425_v17 = vpack.c.bf16 %v380_v10, %v379_v7  ;;  %v349_v19 = vld [vmem:[%s1244_s3 + $0x30] sm:$0xff] }
  0x33   :  { %180 = vmatpush1.bf16.msra.mxu0 %v139_v36  ;;  %v350_v20 = vld [vmem:[%s1244_s3 + $0x38] sm:$0xff]  ;;  %v381_v21 = vld [vmem:[%s1244_s3 + $0x130] sm:$0xff]  ;;  %v434_v22 = vpack.c.bf16 %v398_v14, %v397_v13  ;;  %v367_v24 = vld [vmem:[%s1244_s3 + $0xc0] sm:$0xff] }
  0x34   :  { %253 = vmatpush1.bf16.msra.mxu1 %v141_v39  ;;  %607 = vmatprep.subr.bf16.mxu0 %v415_v40  ;;  %v382_v23 = vld [vmem:[%s1244_s3 + $0x138] sm:$0xff]  ;;  %v368_v25 = vld [vmem:[%s1244_s3 + $0xc8] sm:$0xff]  ;;  %v399_v27 = vld [vmem:[%s1244_s3 + $0x1c0] sm:$0xff]  ;;  %v410_v29 = vpack.c.bf16 %v350_v20, %v349_v19 }
  0x35   :  { %647 = vmatprep.subr.bf16.mxu1 %v431_v43  ;;  %v40_v26 = vld [vmem:[#allocation2 + $0x28] sm:$0xff]  ;;  %v426_v30 = vpack.c.bf16 %v382_v23, %v381_v21  ;;  %v419_v31 = vpack.c.bf16 %v368_v25, %v367_v24  ;;  %v351_v32 = vld [vmem:[%s1244_s3 + $0x40] sm:$0xff]  ;;  %v369_v38 = vld [vmem:[%s1244_s3 + $0xd0] sm:$0xff] }
  0x36   :  { %198 = vmatmul.mubr.bf16.vlgmr.msra.gmra.mrb[0].mxu0 %v43_v45  ;;  %v400_v28 = vld [vmem:[%s1244_s3 + $0x1c8] sm:$0xff]  ;;  %v383_v34 = vld [vmem:[%s1244_s3 + $0x140] sm:$0xff]  ;;  %v45_v35 = vpack.c.bf16 %v40_v26, %v39_v16  ;;  %v370_v39 = vld [vmem:[%s1244_s3 + $0xd8] sm:$0xff] }
  0x37   :  { %271 = vmatmul.mubr.bf16.vlgmr.msra.gmra.mrb[0].mxu1 %v43_v45  ;;  %207 = vmatprep.mubr.bf16.mxu0 %v718_v0  ;;  %v352_v33 = vld [vmem:[%s1244_s3 + $0x48] sm:$0xff]  ;;  %v435_v36 = vpack.c.bf16 %v400_v28, %v399_v27  ;;  %v401_v40 = vld [vmem:[%s1244_s3 + $0x1d0] sm:$0xff]  ;;  %v402_v41 = vld [vmem:[%s1244_s3 + $0x1d8] sm:$0xff]  ;;  %v420_v44 = vpack.c.bf16 %v370_v39, %v369_v38 }
  0x38   :  { %280 = vmatprep.mubr.bf16.mxu1 %v718_v0  ;;  %608 = vmatpush3.bf16.msra.mxu0 %v407_v51  ;;  %v384_v37 = vld [vmem:[%s1244_s3 + $0x148] sm:$0xff]  ;;  %v411_v42 = vpack.c.bf16 %v352_v33, %v351_v32  ;;  %v353_v45 = vld [vmem:[%s1244_s3 + $0x50] sm:$0xff]  ;;  %v354_v46 = vld [vmem:[%s1244_s3 + $0x58] sm:$0xff]  ;;  %v436_v47 = vpack.c.bf16 %v402_v41, %v401_v40 }
  0x39   :  { %648 = vmatpush3.bf16.msra.mxu1 %v423_v53  ;;  %609 = vmatprep.subr.bf16.mxu0 %v416_v54  ;;  %v427_v43 = vpack.c.bf16 %v384_v37, %v383_v34  ;;  %v41_v48 = vld [vmem:[#allocation2 + $0x30] sm:$0xff]  ;;  %v42_v49 = vld [vmem:[#allocation2 + $0x38] sm:$0xff]  ;;  %v412_v50 = vpack.c.bf16 %v354_v46, %v353_v45  ;;  %v372_v55 = vld [vmem:[%s1244_s3 + $0xe8] sm:$0xff] }
  0x3a   :  { %649 = vmatprep.subr.bf16.mxu1 %v432_v58  ;;  %v46_v51 = vpack.c.bf16 %v42_v49, %v41_v48  ;;  %v385_v52 = vld [vmem:[%s1244_s3 + $0x150] sm:$0xff]  ;;  %v386_v53 = vld [vmem:[%s1244_s3 + $0x158] sm:$0xff]  ;;  %v403_v56 = vld [vmem:[%s1244_s3 + $0x1e0] sm:$0xff] }
  0x3b   :  { %v428_v54 = vpack.c.bf16 %v386_v53, %v385_v52  ;;  %v355_v58 = vld [vmem:[%s1244_s3 + $0x60] sm:$0xff]  ;;  %v356_v59 = vld [vmem:[%s1244_s3 + $0x68] sm:$0xff]  ;;  %v405_v5 = vld [vmem:[%s1244_s3 + $0x1f0] sm:$0xff] }
  0x3c   :  { %610 = vmatpush3.bf16.msra.mxu0 %v408_v2  ;;  %v404_v60 = vld [vmem:[%s1244_s3 + $0x1e8] sm:$0xff]  ;;  %v413_v61 = vpack.c.bf16 %v356_v59, %v355_v58  ;;  %v387_v63 = vld [vmem:[%s1244_s3 + $0x160] sm:$0xff]  ;;  %v357_v7 = vld [vmem:[%s1244_s3 + $0x70] sm:$0xff] }
  0x3d   :  { %650 = vmatpush3.bf16.msra.mxu1 %v424_v3  ;;  %611 = vmatprep.subr.bf16.mxu0 %v417_v4  ;;  %v437_v62 = vpack.c.bf16 %v404_v60, %v403_v56  ;;  %v388_v1 = vld [vmem:[%s1244_s3 + $0x168] sm:$0xff]  ;;  %v373_v3 = vld [vmem:[%s1244_s3 + $0xf0] sm:$0xff]  ;;  %v374_v4 = vld [vmem:[%s1244_s3 + $0xf8] sm:$0xff] }
  0x3e   :  { %208 = vmatmul.mubr.bf16.gmra.mrb[4].mxu0 %v44_v8  ;;  %651 = vmatprep.subr.bf16.mxu1 %v433_v9  ;;  %v429_v2 = vpack.c.bf16 %v388_v1, %v387_v63  ;;  %v422_v6 = vpack.c.bf16 %v374_v4, %v373_v3  ;;  %v406_v9 = vld [vmem:[%s1244_s3 + $0x1f8] sm:$0xff]  ;;  %v389_v12 = vld [vmem:[%s1244_s3 + $0x170] sm:$0xff] }
  0x3f   :  { %281 = vmatmul.mubr.bf16.gmra.mrb[4].mxu1 %v44_v8  ;;  %217 = vmatprep.mubr.bf16.mxu0 %v718_v0  ;;  %v358_v8 = vld [vmem:[%s1244_s3 + $0x78] sm:$0xff]  ;;  %v438_v11 = vpack.c.bf16 %v406_v9, %v405_v5 }
  0x40   :  { %290 = vmatprep.mubr.bf16.mxu1 %v718_v0  ;;  %612 = vmatpush3.bf16.msra.mxu0 %v409_v15  ;;  %v414_v10 = vpack.c.bf16 %v358_v8, %v357_v7  ;;  %v390_v13 = vld [vmem:[%s1244_s3 + $0x178] sm:$0xff]  ;;  %v145_v15 = vlaneseq }
  0x41   :  { %652 = vmatpush3.bf16.msra.mxu1 %v425_v17  ;;  %613 = vmatprep.subr.bf16.mxu0 %v418_v18  ;;  %v430_v14 = vpack.c.bf16 %v390_v13, %v389_v12  ;;  %v143_v18 = vld [vmem:[%s1243_s2] sm:$0xf] }
  0x42   :  { %653 = vmatprep.subr.bf16.mxu1 %v434_v22  ;;  %v146_v16 = vshrl.u32 %v145_v15, 7 }
  0x44   :  { %614 = vmatpush3.bf16.msra.mxu0 %v410_v29  ;;  %v147_v17 = vsub.s32 0, %v146_v16  ;;  %v155_v19 = vsub.s32 2, %v146_v16  ;;  %v151_v20 = vsub.s32 1, %v146_v16  ;;  %v159_v21 = vsub.s32 3, %v146_v16 }
  0x45   :  { %654 = vmatpush3.bf16.msra.mxu1 %v426_v30  ;;  %615 = vmatprep.subr.bf16.mxu0 %v419_v31 }
  0x46   :  { %218 = vmatmul.mubr.bf16.gmra.mrb[8].mxu0 %v45_v35  ;;  %655 = vmatprep.subr.bf16.mxu1 %v435_v36  ;;  %v1156_v22 = vrot.slane %v143_v18, %v147_v17  ;;  %v1158_v23 = vrot.slane %v143_v18, %v155_v19  ;;  %v1160_v24 = vrot.slane %v143_v18, %v151_v20 }
  0x47   :  { %291 = vmatmul.mubr.bf16.gmra.mrb[8].mxu1 %v45_v35  ;;  %227 = vmatprep.mubr.bf16.mxu0 %v718_v0  ;;  %v1162_v25 = vrot.slane %v143_v18, %v159_v21 }
  0x48   :  { %300 = vmatprep.mubr.bf16.mxu1 %v718_v0  ;;  %616 = vmatpush3.bf16.msra.mxu0 %v411_v42  ;;  %v371_v0 = vld [vmem:[%s1244_s3 + $0xe0] sm:$0xff] }
  0x49   :  { %656 = vmatpush3.bf16.msra.mxu1 %v427_v43  ;;  %617 = vmatprep.subr.bf16.mxu0 %v420_v44  ;;  %v421_v57 = vpack.c.bf16 %v372_v55, %v371_v0 }
  0x4a   :  { %657 = vmatprep.subr.bf16.mxu1 %v436_v47 }
  0x4c   :  { %618 = vmatpush3.bf16.msra.mxu0 %v412_v50 }
  0x4d   :  { %658 = vmatpush3.bf16.msra.mxu1 %v428_v54  ;;  %619 = vmatprep.subr.bf16.mxu0 %v421_v57 }
  0x4e   :  { %228 = vmatmul.mubr.bf16.gmra.mrb[12].mxu0 %v46_v51  ;;  %659 = vmatprep.subr.bf16.mxu1 %v437_v62 }
  0x4f   :  { %301 = vmatmul.mubr.bf16.gmra.mrb[12].mxu1 %v46_v51 }
  0x50   :  { %620 = vmatpush3.bf16.msra.mxu0 %v413_v61 }
  0x51   :  { %660 = vmatpush3.bf16.msra.mxu1 %v429_v2  ;;  %621 = vmatprep.subr.bf16.mxu0 %v422_v6 }
  0x52   :  { %661 = vmatprep.subr.bf16.mxu1 %v438_v11 }
  0x54   :  { %622 = vmatpush3.bf16.msra.mxu0 %v414_v10 }
  0x55   :  { %662 = vmatpush3.bf16.msra.mxu1 %v430_v14 }
 0x109   :  { %v199_v26 = vpop.f32.mrb[0].mxu0 }
 0x10a   :  { %v200_v27 = vadd.f32 %v199_v26, %v1156_v22  ;;  %v272_v28 = vpop.f32.mrb[0].mxu1  ;;  %v201_v29 = vpop.f32.mrb[1].mxu0 }
 0x10b   :  { %v273_v30 = vadd.f32 %v272_v28, %v1158_v23  ;;  %v202_v31 = vadd.f32 %v201_v29, %v1160_v24  ;;  %v274_v32 = vpop.f32.mrb[1].mxu1  ;;  %v203_v33 = vpop.f32.mrb[2].mxu0 }
 0x10c   :  { %v275_v34 = vadd.f32 %v274_v32, %v1162_v25  ;;  %v204_v35 = vadd.f32 %v203_v33, %v1156_v22  ;;  %v276_v36 = vpop.f32.mrb[2].mxu1  ;;  %v205_v37 = vpop.f32.mrb[3].mxu0  ;;  %v311_v42 = vmax.f32 %v200_v27, 0.0 }
 0x10d   :  { %v313_v38 = vmax.f32 %v273_v30, 0.0  ;;  %v277_v39 = vadd.f32 %v276_v36, %v1158_v23  ;;  %v206_v40 = vadd.f32 %v205_v37, %v1160_v24  ;;  %v278_v41 = vpop.f32.mrb[3].mxu1  ;;  %v312_v46 = vmax.f32 %v202_v31, 0.0 }
 0x10e   :  { %v314_v43 = vmax.f32 %v275_v34, 0.0  ;;  %v315_v44 = vmax.f32 %v204_v35, 0.0  ;;  %v279_v45 = vadd.f32 %v278_v41, %v1162_v25 }
 0x10f   :  { %v317_v47 = vmax.f32 %v277_v39, 0.0  ;;  %v316_v48 = vmax.f32 %v206_v40, 0.0 }
 0x110   :  { %v439_v49 = vpack.c.bf16 %v315_v44, %v311_v42  ;;  %v318_v50 = vmax.f32 %v279_v45, 0.0 }
 0x111   :  { %v441_v51 = vpack.c.bf16 %v317_v47, %v313_v38  ;;  %v440_v52 = vpack.c.bf16 %v316_v48, %v312_v46  ;;  %v209_v53 = vpop.f32.mrb[4].mxu0 }
 0x112   :  { %v442_v54 = vpack.c.bf16 %v318_v50, %v314_v43  ;;  %v210_v0 = vadd.f32 %v209_v53, %v1156_v22  ;;  %v282_v55 = vpop.f32.mrb[4].mxu1  ;;  %v211_v56 = vpop.f32.mrb[5].mxu0 }
 0x113   :  { %v283_v57 = vadd.f32 %v282_v55, %v1158_v23  ;;  %v212_v58 = vadd.f32 %v211_v56, %v1160_v24  ;;  %v284_v59 = vpop.f32.mrb[5].mxu1  ;;  %v213_v60 = vpop.f32.mrb[6].mxu0  ;;  %494 = vmatprep.mubr.bf16.mxu0 %v440_v52 }
 0x114   :  { %v285_v61 = vadd.f32 %v284_v59, %v1162_v25  ;;  %v214_v62 = vadd.f32 %v213_v60, %v1156_v22  ;;  %v286_v63 = vpop.f32.mrb[6].mxu1  ;;  %559 = vmatprep.mubr.bf16.mxu1 %v442_v54  ;;  %v215_v1 = vpop.f32.mrb[7].mxu0  ;;  %495 = vmatmul.mubr.bf16.vlgmr.msra.gmra.mrb[16].mxu0 %v439_v49  ;;  %v319_v6 = vmax.f32 %v210_v0, 0.0 }
 0x115   :  { %v321_v2 = vmax.f32 %v283_v57, 0.0  ;;  %v287_v3 = vadd.f32 %v286_v63, %v1158_v23  ;;  %v216_v4 = vadd.f32 %v215_v1, %v1160_v24  ;;  %v288_v5 = vpop.f32.mrb[7].mxu1  ;;  %560 = vmatmul.mubr.bf16.vlgmr.msra.gmra.mrb[16].mxu1 %v441_v51  ;;  %v320_v10 = vmax.f32 %v212_v58, 0.0 }
 0x116   :  { %v322_v7 = vmax.f32 %v285_v61, 0.0  ;;  %v323_v8 = vmax.f32 %v214_v62, 0.0  ;;  %v289_v9 = vadd.f32 %v288_v5, %v1162_v25 }
 0x117   :  { %v325_v11 = vmax.f32 %v287_v3, 0.0  ;;  %v324_v12 = vmax.f32 %v216_v4, 0.0 }
 0x118   :  { %v443_v13 = vpack.c.bf16 %v323_v8, %v319_v6  ;;  %v326_v14 = vmax.f32 %v289_v9, 0.0 }
 0x119   :  { %v445_v15 = vpack.c.bf16 %v325_v11, %v321_v2  ;;  %v444_v16 = vpack.c.bf16 %v324_v12, %v320_v10  ;;  %v219_v17 = vpop.f32.mrb[8].mxu0 }
 0x11a   :  { %v446_v18 = vpack.c.bf16 %v326_v14, %v322_v7  ;;  %v220_v19 = vadd.f32 %v219_v17, %v1156_v22  ;;  %v292_v20 = vpop.f32.mrb[8].mxu1  ;;  %v221_v21 = vpop.f32.mrb[9].mxu0 }
 0x11b   :  { %v293_v26 = vadd.f32 %v292_v20, %v1158_v23  ;;  %v222_v27 = vadd.f32 %v221_v21, %v1160_v24  ;;  %v294_v28 = vpop.f32.mrb[9].mxu1  ;;  %v223_v29 = vpop.f32.mrb[10].mxu0  ;;  %502 = vmatprep.mubr.bf16.mxu0 %v444_v16 }
 0x11c   :  { %v295_v30 = vadd.f32 %v294_v28, %v1162_v25  ;;  %v224_v31 = vadd.f32 %v223_v29, %v1156_v22  ;;  %v296_v32 = vpop.f32.mrb[10].mxu1  ;;  %567 = vmatprep.mubr.bf16.mxu1 %v446_v18  ;;  %v225_v33 = vpop.f32.mrb[11].mxu0  ;;  %503 = vmatmul.mubr.bf16.gmra.mrb[20].mxu0 %v443_v13  ;;  %v327_v38 = vmax.f32 %v220_v19, 0.0  ;;  %v1199_v13 = vld [vmem:[%s1245_s4] ss:$0 sm:$0xff] }
 0x11d   :  { %v329_v34 = vmax.f32 %v293_v26, 0.0  ;;  %v297_v35 = vadd.f32 %v296_v32, %v1158_v23  ;;  %v226_v36 = vadd.f32 %v225_v33, %v1160_v24  ;;  %v298_v37 = vpop.f32.mrb[11].mxu1  ;;  %568 = vmatmul.mubr.bf16.gmra.mrb[20].mxu1 %v445_v15  ;;  %v328_v42 = vmax.f32 %v222_v27, 0.0 }
 0x11e   :  { %v330_v39 = vmax.f32 %v295_v30, 0.0  ;;  %v331_v40 = vmax.f32 %v224_v31, 0.0  ;;  %v299_v41 = vadd.f32 %v298_v37, %v1162_v25 }
 0x11f   :  { %v333_v43 = vmax.f32 %v297_v35, 0.0  ;;  %v332_v44 = vmax.f32 %v226_v36, 0.0 }
 0x120   :  { %v447_v45 = vpack.c.bf16 %v331_v40, %v327_v38  ;;  %v334_v46 = vmax.f32 %v299_v41, 0.0 }
 0x121   :  { %v449_v47 = vpack.c.bf16 %v333_v43, %v329_v34  ;;  %v448_v48 = vpack.c.bf16 %v332_v44, %v328_v42  ;;  %v229_v49 = vpop.f32.mrb[12].mxu0 }
 0x122   :  { %v450_v50 = vpack.c.bf16 %v334_v46, %v330_v39  ;;  %v230_v51 = vadd.f32 %v229_v49, %v1156_v22  ;;  %v302_v52 = vpop.f32.mrb[12].mxu1  ;;  %v231_v53 = vpop.f32.mrb[13].mxu0 }
 0x123   :  { %v303_v54 = vadd.f32 %v302_v52, %v1158_v23  ;;  %v232_v0 = vadd.f32 %v231_v53, %v1160_v24  ;;  %v304_v55 = vpop.f32.mrb[13].mxu1  ;;  %v233_v56 = vpop.f32.mrb[14].mxu0  ;;  %510 = vmatprep.mubr.bf16.mxu0 %v448_v48 }
 0x124   :  { %v305_v57 = vadd.f32 %v304_v55, %v1162_v25  ;;  %v234_v58 = vadd.f32 %v233_v56, %v1156_v22  ;;  %v306_v59 = vpop.f32.mrb[14].mxu1  ;;  %575 = vmatprep.mubr.bf16.mxu1 %v450_v50  ;;  %v235_v60 = vpop.f32.mrb[15].mxu0  ;;  %511 = vmatmul.mubr.bf16.gmra.mrb[24].mxu0 %v447_v45  ;;  %v335_v2 = vmax.f32 %v230_v51, 0.0 }
 0x125   :  { %v337_v61 = vmax.f32 %v303_v54, 0.0  ;;  %v307_v62 = vadd.f32 %v306_v59, %v1158_v23  ;;  %v236_v63 = vadd.f32 %v235_v60, %v1160_v24  ;;  %v308_v1 = vpop.f32.mrb[15].mxu1  ;;  %576 = vmatmul.mubr.bf16.gmra.mrb[24].mxu1 %v449_v47  ;;  %v336_v6 = vmax.f32 %v232_v0, 0.0 }
 0x126   :  { %v338_v3 = vmax.f32 %v305_v57, 0.0  ;;  %v339_v4 = vmax.f32 %v234_v58, 0.0  ;;  %v309_v5 = vadd.f32 %v308_v1, %v1162_v25 }
 0x127   :  { %v341_v7 = vmax.f32 %v307_v62, 0.0  ;;  %v340_v8 = vmax.f32 %v236_v63, 0.0 }
 0x128   :  { %v451_v22 = vpack.c.bf16 %v339_v4, %v335_v2  ;;  %v342_v9 = vmax.f32 %v309_v5, 0.0 }
 0x129   :  { %v453_v10 = vpack.c.bf16 %v341_v7, %v337_v61  ;;  %v452_v11 = vpack.c.bf16 %v340_v8, %v336_v6 }
 0x12a   :  { %v454_v12 = vpack.c.bf16 %v342_v9, %v338_v3 }
 0x12b   :  { %518 = vmatprep.mubr.bf16.mxu0 %v452_v11 }
 0x12c   :  { %583 = vmatprep.mubr.bf16.mxu1 %v454_v12  ;;  %519 = vmatmul.mubr.bf16.gmra.mrb[28].mxu0 %v451_v22 }
 0x12d   :  { %584 = vmatmul.mubr.bf16.gmra.mrb[28].mxu1 %v453_v10 }
 0x1e7   :  { %v623_v23 = vpop.f32.mrb[16].mxu0 }
 0x1e8   :  { %v663_v24 = vpop.f32.mrb[16].mxu1  ;;  %v624_v25 = vpop.f32.mrb[17].mxu0 }
 0x1e9   :  { %v625_v14 = vadd.f32 %v624_v25, %v623_v23  ;;  %v664_v15 = vpop.f32.mrb[17].mxu1  ;;  %v626_v16 = vpop.f32.mrb[18].mxu0 }
 0x1ea   :  { %v665_v17 = vadd.f32 %v664_v15, %v663_v24  ;;  %v666_v18 = vpop.f32.mrb[18].mxu1  ;;  %v627_v19 = vpop.f32.mrb[19].mxu0 }
 0x1eb   :  { %v497_v20 = vadd.f32 %v625_v14, %v1199_v13  ;;  %v628_v21 = vadd.f32 %v627_v19, %v626_v16  ;;  %v667_v26 = vpop.f32.mrb[19].mxu1 }
 0x1ec   :  { %v668_v27 = vadd.f32 %v667_v26, %v666_v18 }
 0x1ed   :  { %v562_v28 = vadd.f32 %v665_v17, %v497_v20  ;;  %v500_v29 = vadd.f32 %v628_v21, %v1199_v13 }
 0x1ef   :  { %593 = vst.msk [vmem:[%s1246_s5] sm:$0xff] %vm592_vm0, %v562_v28  ;;  %v565_v30 = vadd.f32 %v668_v27, %v500_v29  ;;  %v629_v31 = vpop.f32.mrb[20].mxu0 }
 0x1f0   :  { %v669_v32 = vpop.f32.mrb[20].mxu1  ;;  %v630_v33 = vpop.f32.mrb[21].mxu0 }
 0x1f1   :  { %594 = vst.msk [vmem:[%s1246_s5 + $0x8] sm:$0xff] %vm592_vm0, %v565_v30  ;;  %v631_v34 = vadd.f32 %v630_v33, %v629_v31  ;;  %v670_v35 = vpop.f32.mrb[21].mxu1  ;;  %v632_v36 = vpop.f32.mrb[22].mxu0 }
 0x1f2   :  { %v671_v37 = vadd.f32 %v670_v35, %v669_v32  ;;  %v672_v38 = vpop.f32.mrb[22].mxu1  ;;  %v633_v39 = vpop.f32.mrb[23].mxu0 }
 0x1f3   :  { %v505_v40 = vadd.f32 %v631_v34, %v1199_v13  ;;  %v634_v41 = vadd.f32 %v633_v39, %v632_v36  ;;  %v673_v42 = vpop.f32.mrb[23].mxu1 }
 0x1f4   :  { %v674_v43 = vadd.f32 %v673_v42, %v672_v38 }
 0x1f5   :  { %v570_v44 = vadd.f32 %v671_v37, %v505_v40  ;;  %v508_v45 = vadd.f32 %v634_v41, %v1199_v13 }
 0x1f7   :  { %595 = vst.msk [vmem:[%s1246_s5 + $0x10] sm:$0xff] %vm592_vm0, %v570_v44  ;;  %v573_v46 = vadd.f32 %v674_v43, %v508_v45  ;;  %v635_v47 = vpop.f32.mrb[24].mxu0 }
 0x1f8   :  { %v675_v48 = vpop.f32.mrb[24].mxu1  ;;  %v636_v49 = vpop.f32.mrb[25].mxu0 }
 0x1f9   :  { %596 = vst.msk [vmem:[%s1246_s5 + $0x18] sm:$0xff] %vm592_vm0, %v573_v46  ;;  %v637_v50 = vadd.f32 %v636_v49, %v635_v47  ;;  %v676_v51 = vpop.f32.mrb[25].mxu1  ;;  %v638_v52 = vpop.f32.mrb[26].mxu0 }
 0x1fa   :  { %v677_v53 = vadd.f32 %v676_v51, %v675_v48  ;;  %v678_v54 = vpop.f32.mrb[26].mxu1  ;;  %v639_v0 = vpop.f32.mrb[27].mxu0 }
 0x1fb   :  { %v513_v55 = vadd.f32 %v637_v50, %v1199_v13  ;;  %v640_v56 = vadd.f32 %v639_v0, %v638_v52  ;;  %v679_v57 = vpop.f32.mrb[27].mxu1 }
 0x1fc   :  { %v680_v58 = vadd.f32 %v679_v57, %v678_v54 }
 0x1fd   :  { %v578_v59 = vadd.f32 %v677_v53, %v513_v55  ;;  %v516_v60 = vadd.f32 %v640_v56, %v1199_v13 }
 0x1ff   :  { %597 = vst.msk [vmem:[%s1246_s5 + $0x20] sm:$0xff] %vm592_vm0, %v578_v59  ;;  %v581_v61 = vadd.f32 %v680_v58, %v516_v60  ;;  %v641_v62 = vpop.f32.mrb[28].mxu0 }
 0x200   :  { %v681_v63 = vpop.f32.mrb[28].mxu1  ;;  %v642_v1 = vpop.f32.mrb[29].mxu0 }
 0x201   :  { %598 = vst.msk [vmem:[%s1246_s5 + $0x28] sm:$0xff] %vm592_vm0, %v581_v61  ;;  %v643_v2 = vadd.f32 %v642_v1, %v641_v62  ;;  %v682_v3 = vpop.f32.mrb[29].mxu1  ;;  %v644_v4 = vpop.f32.mrb[30].mxu0 }
 0x202   :  { %v683_v5 = vadd.f32 %v682_v3, %v681_v63  ;;  %v684_v6 = vpop.f32.mrb[30].mxu1  ;;  %v645_v7 = vpop.f32.mrb[31].mxu0 }
 0x203   :  { %v521_v8 = vadd.f32 %v643_v2, %v1199_v13  ;;  %v646_v22 = vadd.f32 %v645_v7, %v644_v4  ;;  %v685_v9 = vpop.f32.mrb[31].mxu1 }
 0x204   :  { %v686_v10 = vadd.f32 %v685_v9, %v684_v6 }
 0x205   :  { %v586_v11 = vadd.f32 %v683_v5, %v521_v8  ;;  %v524_v12 = vadd.f32 %v646_v22, %v1199_v13 }
 0x207   :  { %599 = vst.msk [vmem:[%s1246_s5 + $0x30] sm:$0xff] %vm592_vm0, %v586_v11  ;;  %v589_v23 = vadd.f32 %v686_v10, %v524_v12 }
 0x209   :  { %600 = vst.msk [vmem:[%s1246_s5 + $0x38] sm:$0xff] %vm592_vm0, %v589_v23 }
 0x20a   :  { %605 = vsyncpa [#allocation3], 1 }

</bundles_post_ra>
